<compile_context>
chip_gen: v7x
topology: tpu7x:2x2x1
jax: 0.10.0
libtpu: 0.0.40
codegen_flags: <defaults>
</compile_context>

<pallas_src>
import jax
import jax.numpy as jnp
from jax.experimental import pallas as pl
from jax.experimental.pallas import tpu as pltpu

F_IN = 32        # dataset.data.shape[1]
HIDDEN = 4
OUT = 1

LANE = 128
DEFAULT_TILE_B = 1024   # large batch tile (multiple of 128); review suggested 512-4096

# Packed parameter layout (single f32 block; replaces six separately-DMA'd inputs):
#   [0:4, 0:32]  W1^T (HIDDEN, F_IN)      [0:4, 40:41] b1 (HIDDEN, 1)
#   [0:4, 32:36] W2^T (HIDDEN, HIDDEN)    [0:4, 41:42] b2 (HIDDEN, 1)
#   [0:1, 36:40] W3^T (OUT, HIDDEN)       [0:1, 42:43] b3 (OUT, 1)
C_W1, C_W2, C_W3, C_B1, C_B2, C_B3 = 0, 32, 36, 40, 41, 42
PACK_ROWS, PACK_COLS = 8, 48


def _round_up(a, m):
    return pl.cdiv(a, m) * m


def _erf_approx(x):
    """Abramowitz & Stegun 7.1.26 erf approximation (max abs err ~1.5e-7).

    The divide is an EUP approximate reciprocal + one Newton refinement step, so
    the whole erf epilogue rides on otherwise-idle EUP/VALU slots.
    """
    a1, a2, a3, a4, a5 = (0.254829592, -0.284496736, 1.421413741,
                          -1.453152027, 1.061405429)
    p = 0.3275911
    ax = jnp.abs(x)
    d = 1.0 + p * ax
    t = pl.reciprocal(d, approx=True)
    t = t * (2.0 - d * t)                       # Newton step -> ~full f32 accuracy
    poly = ((((a5 * t + a4) * t + a3) * t + a2) * t + a1) * t
    r = 1.0 - poly * jnp.exp(-ax * ax)
    return jnp.where(x < 0.0, -r, r)


def _mlp_kernel(xt_ref, p_ref, o_ref):
    xt = xt_ref[...]                              # (F_IN, TILE_B), batch on lanes
    p = p_ref[...]                                # (8, 48) packed params (1 vreg)
    w1t = p[0:HIDDEN, C_W1:C_W1 + F_IN]           # (4, 32)
    w2t = p[0:HIDDEN, C_W2:C_W2 + HIDDEN]         # (4, 4)
    w3t = p[0:OUT,    C_W3:C_W3 + HIDDEN]         # (1, 4)
    b1 = p[0:HIDDEN, C_B1:C_B1 + 1]               # (4, 1)
    b2 = p[0:HIDDEN, C_B2:C_B2 + 1]               # (4, 1)
    b3 = p[0:OUT,    C_B3:C_B3 + 1]               # (1, 1)

    h1 = jnp.dot(w1t, xt, preferred_element_type=jnp.float32) + b1   # (4, TB)
    h1 = jnp.maximum(h1, 0.0)                                        # ReLU
    h2 = jnp.dot(w2t, h1, preferred_element_type=jnp.float32) + b2   # (4, TB)
    h2 = jnp.maximum(h2, 0.0)                                        # ReLU
    y = jnp.dot(w3t, h2, preferred_element_type=jnp.float32) + b3    # (1, TB)
    o_ref[...] = _erf_approx(y).astype(o_ref.dtype)                  # lane-dense store


def net_4n_forward(x, packed_params, tile_b=None):
    """x: (B, F_IN) f32 -> (B, 1) f32. Ragged B handled via padding."""
    B, F = x.shape
    assert F == F_IN
    if tile_b is None:
        tile_b = min(DEFAULT_TILE_B, _round_up(B, LANE))
    tile_b = _round_up(tile_b, LANE)
    B_pad = _round_up(B, tile_b)

    xt = x.T                                            # (F, B): batch -> lanes
    if B_pad != B:
        xt = jnp.pad(xt, ((0, 0), (0, B_pad - B)))      # pad ragged tail

    grid = (B_pad // tile_b,)
    flops = 2 * B_pad * (F_IN * HIDDEN + HIDDEN * HIDDEN + HIDDEN * OUT)
    bytes_accessed = 4 * (B_pad * (F_IN + OUT) + PACK_ROWS * PACK_COLS)

    out_t = pl.pallas_call(
        _mlp_kernel,
        out_shape=jax.ShapeDtypeStruct((OUT, B_pad), jnp.float32),
        grid_spec=pltpu.PrefetchScalarGridSpec(
            num_scalar_prefetch=0,
            grid=grid,
            in_specs=[
                pl.BlockSpec((F_IN, tile_b), lambda i: (0, i)),          # x^T tile
                pl.BlockSpec((PACK_ROWS, PACK_COLS), lambda i: (0, 0)),  # packed params
            ],
            out_specs=pl.BlockSpec((OUT, tile_b), lambda i: (0, i)),     # (1, TB) slab
        ),
        compiler_params=pltpu.CompilerParams(
            dimension_semantics=("parallel",)),          # 2-TC sharding on v7x
        cost_estimate=pl.CostEstimate(
            flops=flops,
            transcendentals=2 * B_pad,                   # exp + reciprocal per row
            bytes_accessed=bytes_accessed),
    )(xt, packed_params)

    return out_t[:, :B].T                                # back to (B, 1)


def init_params(key):
    """nn.Linear-style init: U(-1/sqrt(fan_in), 1/sqrt(fan_in)); W stored [in, out]."""
    def linear(k, fan_in, fan_out):
        kw, kb = jax.random.split(k)
        bound = 1.0 / (fan_in ** 0.5)
        w = jax.random.uniform(kw, (fan_in, fan_out), jnp.float32, -bound, bound)
        b = jax.random.uniform(kb, (fan_out,), jnp.float32, -bound, bound)
        return w, b
    k1, k2, k3 = jax.random.split(key, 3)
    w1, b1 = linear(k1, F_IN, HIDDEN)
    w2, b2 = linear(k2, HIDDEN, HIDDEN)
    w3, b3 = linear(k3, HIDDEN, OUT)
    return (w1, b1, w2, b2, w3, b3)


def pack_params(params):
    """Pack all six parameter tensors into one (8, 48) f32 block (single DMA)."""
    w1, b1, w2, b2, w3, b3 = params
    p = jnp.zeros((PACK_ROWS, PACK_COLS), jnp.float32)
    p = p.at[0:HIDDEN, C_W1:C_W1 + F_IN].set(w1.T)
    p = p.at[0:HIDDEN, C_W2:C_W2 + HIDDEN].set(w2.T)
    p = p.at[0:OUT,    C_W3:C_W3 + HIDDEN].set(w3.T)
    p = p.at[0:HIDDEN, C_B1:C_B1 + 1].set(b1.reshape(HIDDEN, 1))
    p = p.at[0:HIDDEN, C_B2:C_B2 + 1].set(b2.reshape(HIDDEN, 1))
    p = p.at[0:OUT,    C_B3:C_B3 + 1].set(b3.reshape(OUT, 1))
    return p


def reference_forward(x, params):
    w1, b1, w2, b2, w3, b3 = params
    h1 = jnp.maximum(x @ w1 + b1, 0.0)
    h2 = jnp.maximum(h1 @ w2 + b2, 0.0)
    return jax.lax.erf(h2 @ w3 + b3)


if __name__ == "__main__":
    key = jax.random.PRNGKey(0)
    k_param, k_x1, k_x2 = jax.random.split(key, 3)
    params = init_params(k_param)
    packed = pack_params(params)

    # Small batch (pads up to one 128-lane tile, single grid step).
    x1 = jax.random.normal(k_x1, (16, F_IN), jnp.float32)
    out1 = jax.block_until_ready(net_4n_forward(x1, packed))
    ref1 = reference_forward(x1, params)
    assert out1.shape == (16, 1) and out1.dtype == jnp.float32
    assert jnp.allclose(out1, ref1, atol=1e-4, rtol=1e-4)

    # Ragged multi-tile batch: exercises cdiv grid, tail padding, and >=2
    # parallel grid steps (v7x two-TensorCore sharding path).
    x2 = jax.random.normal(k_x2, (300, F_IN), jnp.float32)
    out2 = jax.block_until_ready(net_4n_forward(x2, packed, tile_b=128))
    ref2 = reference_forward(x2, params)
    assert out2.shape == (300, 1)
    assert jnp.allclose(out2, ref2, atol=1e-4, rtol=1e-4)

    print("KERNEL_OK")
</pallas_src>

<mosaic_0001>
module attributes {stable_mosaic.version = 11 : i64} {
  func.func @_mlp_kernel(%arg0: i32, %arg1: memref<32x128xf32, #tpu.memory_space<vmem>>, %arg2: memref<8x48xf32, #tpu.memory_space<vmem>>, %arg3: memref<1x128xf32, #tpu.memory_space<vmem>>) attributes {dimension_semantics = [#tpu.dimension_semantics<parallel>], iteration_bounds = array<i64: 1>, scalar_prefetch = 0 : i64, scratch_operands = 0 : i64, tpu.core_type = #tpu.core_type<tc>, window_params = [{transform_indices = @transform_0, window_bounds = array<i64: 32, 128>}, {pipeline_mode = #tpu.pipeline_mode<synchronous>, transform_indices = @transform_1, window_bounds = array<i64: 8, 48>}, {transform_indices = @transform_2, window_bounds = array<i64: 1, 128>}]} {
    %c0 = arith.constant 0 : index
    %c0_0 = arith.constant 0 : index
    %0 = vector.load %arg1[%c0, %c0_0] : memref<32x128xf32, #tpu.memory_space<vmem>>, vector<32x128xf32>
    %c0_1 = arith.constant 0 : index
    %c0_2 = arith.constant 0 : index
    %1 = vector.load %arg2[%c0_1, %c0_2] : memref<8x48xf32, #tpu.memory_space<vmem>>, vector<8x48xf32>
    %2 = vector.extract_strided_slice %1 {offsets = [0, 0], sizes = [4, 32], strides = [1, 1]} : vector<8x48xf32> to vector<4x32xf32>
    %3 = vector.extract_strided_slice %1 {offsets = [0, 32], sizes = [4, 4], strides = [1, 1]} : vector<8x48xf32> to vector<4x4xf32>
    %4 = vector.extract_strided_slice %1 {offsets = [0, 36], sizes = [1, 4], strides = [1, 1]} : vector<8x48xf32> to vector<1x4xf32>
    %5 = vector.extract_strided_slice %1 {offsets = [0, 40], sizes = [4, 1], strides = [1, 1]} : vector<8x48xf32> to vector<4x1xf32>
    %6 = vector.extract_strided_slice %1 {offsets = [0, 41], sizes = [4, 1], strides = [1, 1]} : vector<8x48xf32> to vector<4x1xf32>
    %7 = vector.extract_strided_slice %1 {offsets = [0, 42], sizes = [1, 1], strides = [1, 1]} : vector<8x48xf32> to vector<1x1xf32>
    %cst = arith.constant dense<0.000000e+00> : vector<4x128xf32>
    %8 = tpu.matmul %2, %0, %cst {dimension_numbers = #tpu.dot_dimension_numbers<[1], [0], [0], [1], [0, 0, 1, 1], [], []>} : vector<4x32xf32>, vector<32x128xf32>, vector<4x128xf32> -> vector<4x128xf32>
    %9 = vector.broadcast %5 : vector<4x1xf32> to vector<4x128xf32>
    %10 = arith.addf %8, %9 : vector<4x128xf32>
    %cst_3 = arith.constant 0.000000e+00 : f32
    %11 = vector.broadcast %cst_3 : f32 to vector<4x128xf32>
    %12 = arith.maximumf %10, %11 : vector<4x128xf32>
    %cst_4 = arith.constant dense<0.000000e+00> : vector<4x128xf32>
    %13 = tpu.matmul %3, %12, %cst_4 {dimension_numbers = #tpu.dot_dimension_numbers<[1], [0], [0], [1], [0, 0, 1, 1], [], []>} : vector<4x4xf32>, vector<4x128xf32>, vector<4x128xf32> -> vector<4x128xf32>
    %14 = vector.broadcast %6 : vector<4x1xf32> to vector<4x128xf32>
    %15 = arith.addf %13, %14 : vector<4x128xf32>
    %cst_5 = arith.constant 0.000000e+00 : f32
    %16 = vector.broadcast %cst_5 : f32 to vector<4x128xf32>
    %17 = arith.maximumf %15, %16 : vector<4x128xf32>
    %cst_6 = arith.constant dense<0.000000e+00> : vector<1x128xf32>
    %18 = tpu.matmul %4, %17, %cst_6 {dimension_numbers = #tpu.dot_dimension_numbers<[1], [0], [0], [1], [0, 0, 1, 1], [], []>} : vector<1x4xf32>, vector<4x128xf32>, vector<1x128xf32> -> vector<1x128xf32>
    %19 = vector.broadcast %7 : vector<1x1xf32> to vector<1x128xf32>
    %20 = arith.addf %18, %19 : vector<1x128xf32>
    %21 = math.absf %20 : vector<1x128xf32>
    %cst_7 = arith.constant 0.327591091 : f32
    %22 = vector.broadcast %cst_7 : f32 to vector<1x128xf32>
    %23 = arith.mulf %22, %21 : vector<1x128xf32>
    %cst_8 = arith.constant 1.000000e+00 : f32
    %24 = vector.broadcast %cst_8 : f32 to vector<1x128xf32>
    %25 = arith.addf %24, %23 : vector<1x128xf32>
    %26 = tpu.reciprocal %25 {approx = true} : vector<1x128xf32> -> vector<1x128xf32>
    %27 = arith.mulf %25, %26 : vector<1x128xf32>
    %cst_9 = arith.constant 2.000000e+00 : f32
    %28 = vector.broadcast %cst_9 : f32 to vector<1x128xf32>
    %29 = arith.subf %28, %27 : vector<1x128xf32>
    %30 = arith.mulf %26, %29 : vector<1x128xf32>
    %cst_10 = arith.constant 1.06140542 : f32
    %31 = vector.broadcast %cst_10 : f32 to vector<1x128xf32>
    %32 = arith.mulf %31, %30 : vector<1x128xf32>
    %cst_11 = arith.constant -1.45315206 : f32
    %33 = vector.broadcast %cst_11 : f32 to vector<1x128xf32>
    %34 = arith.addf %32, %33 : vector<1x128xf32>
    %35 = arith.mulf %34, %30 : vector<1x128xf32>
    %cst_12 = arith.constant 1.42141378 : f32
    %36 = vector.broadcast %cst_12 : f32 to vector<1x128xf32>
    %37 = arith.addf %35, %36 : vector<1x128xf32>
    %38 = arith.mulf %37, %30 : vector<1x128xf32>
    %cst_13 = arith.constant -0.284496725 : f32
    %39 = vector.broadcast %cst_13 : f32 to vector<1x128xf32>
    %40 = arith.addf %38, %39 : vector<1x128xf32>
    %41 = arith.mulf %40, %30 : vector<1x128xf32>
    %cst_14 = arith.constant 0.254829586 : f32
    %42 = vector.broadcast %cst_14 : f32 to vector<1x128xf32>
    %43 = arith.addf %41, %42 : vector<1x128xf32>
    %44 = arith.mulf %43, %30 : vector<1x128xf32>
    %cst_15 = arith.constant 0.000000e+00 : f32
    %45 = vector.broadcast %cst_15 : f32 to vector<1x128xf32>
    %46 = arith.subf %45, %21 : vector<1x128xf32>
    %47 = arith.mulf %46, %21 : vector<1x128xf32>
    %48 = math.exp %47 : vector<1x128xf32>
    %49 = arith.mulf %44, %48 : vector<1x128xf32>
    %cst_16 = arith.constant 1.000000e+00 : f32
    %50 = vector.broadcast %cst_16 : f32 to vector<1x128xf32>
    %51 = arith.subf %50, %49 : vector<1x128xf32>
    %cst_17 = arith.constant 0.000000e+00 : f32
    %52 = vector.broadcast %cst_17 : f32 to vector<1x128xf32>
    %53 = arith.cmpf olt, %20, %52 : vector<1x128xf32>
    %cst_18 = arith.constant 0.000000e+00 : f32
    %54 = vector.broadcast %cst_18 : f32 to vector<1x128xf32>
    %55 = arith.subf %54, %51 : vector<1x128xf32>
    %56 = arith.select %53, %55, %51 : vector<1x128xi1>, vector<1x128xf32>
    %c0_19 = arith.constant 0 : index
    %c0_20 = arith.constant 0 : index
    %57 = vector.load %arg3[%c0_19, %c0_20] : memref<1x128xf32, #tpu.memory_space<vmem>>, vector<1x128xf32>
    tpu.vector_store %arg3[%c0_19, %c0_20], %56 {strides = array<i32>} : memref<1x128xf32, #tpu.memory_space<vmem>>, vector<1x128xf32>,
    return
  }
  func.func @transform_0(%arg0: i32) -> (i32, i32) {
    %c0_i32 = arith.constant 0 : i32
    %c0_i32_0 = arith.constant 0 : i32
    return %c0_i32, %arg0 : i32, i32
  }
  func.func @transform_1(%arg0: i32) -> (i32, i32) {
    %c0_i32 = arith.constant 0 : i32
    %c0_i32_0 = arith.constant 0 : i32
    %c0_i32_1 = arith.constant 0 : i32
    return %c0_i32, %c0_i32_0 : i32, i32
  }
  func.func @transform_2(%arg0: i32) -> (i32, i32) {
    %c0_i32 = arith.constant 0 : i32
    %c0_i32_0 = arith.constant 0 : i32
    return %c0_i32, %arg0 : i32, i32
  }
}

</mosaic_0001>

<bundles_post_ra>
// kernel: tpu_custom_call.1
= control target key start
LH: loop header
LB: loop body
LE: loop exit
PB: predicated region body
PF: predicated region fallthrough
CT: control target
= control target key end

     0   :  { %7 = vsyncpa [#allocation3], 0  ;;  %s531_s0 = inlined_call_operand.hbm [shape: f32[32,128], index: 0, kind: input, shape index: {}]   ;;  %s532_s1 = inlined_call_operand.hbm [shape: f32[8,48], index: 1, kind: input, shape index: {}]   ;;  %s533_s2 = inlined_call_operand.hbm [shape: f32[1,128], index: 2, kind: output, shape index: {}]  }
   0x1   :  { %8 = vsyncpa [#allocation6], 0 }
   0x2   :  { %9 = vsyncpa [#allocation4], 0  ;;  %s462_s9 = smov [#allocation2]   ;;  %s390_s13 = scalar_lea.hbm %s531_s0, 512 }
   0x3   :  { %s15_s10 = sshll.u32 %s462_s9, 4  ;;  %p391_p0 = scmp.ne.s32.totalorder %s531_s0, %s390_s13  ;;  %s16_s10 = int_to_ptr.vmem [resolvable:$true] %s15_s10 }
   0x4   :  { %p394_p1 = scmp.lt.u32.totalorder %s390_s13, %s531_s0 }
   0x6   :  { %p396_p2 = pnand %p394_p1, %p391_p0 }
   0x8   :  { %399 = shalt.err (!%p396_p2)
}
   0x9   :  { %s400_s18 = scalar_lea.vmem %s16_s10, 512  ;;  %p405_p4 = scmp.lt.s32.totalorder %s16_s10, %s16_s10 }
   0xa   :  { %p401_p3 = scmp.ne.s32.totalorder %s16_s10, %s400_s18  ;;  %p406_p5 = scmp.lt.s32.totalorder %s400_s18, %s400_s18 }
   0xc   :  { %p407_p6 = por %p406_p5, %p405_p4 }
   0xe   :  { %p408_p7 = pnand %p407_p6, %p401_p3 }
  0x10   :  { %411 = shalt.err (!%p408_p7)
}
  0x11   :  { %s463_s19 = smov 128   ;;  %s464_s20 = smov 8  }
  0x12   :  { %21 = dma.hbm_to_vmem [thread:$0]  %s531_s0, 512, %s16_s10, [#allocation3], %s463_s19, %s463_s19, %s464_s20  }
  0x13   :  { %s465_s23 = smov [#allocation5]   ;;  %s412_s27 = scalar_lea.hbm %s532_s1, 128 }
  0x14   :  { %s28_s24 = sshll.u32 %s465_s23, 4  ;;  %p413_p8 = scmp.ne.s32.totalorder %s532_s1, %s412_s27  ;;  %s29_s24 = int_to_ptr.vmem [resolvable:$true] %s28_s24 }
  0x15   :  { %p416_p9 = scmp.lt.u32.totalorder %s412_s27, %s532_s1 }
  0x17   :  { %p418_p10 = pnand %p416_p9, %p413_p8 }
  0x19   :  { %421 = shalt.err (!%p418_p10)
}
  0x1a   :  { %s422_s4 = scalar_lea.vmem %s29_s24, 128  ;;  %p427_p12 = scmp.lt.s32.totalorder %s29_s24, %s29_s24 }
  0x1b   :  { %p423_p11 = scmp.ne.s32.totalorder %s29_s24, %s422_s4  ;;  %p428_p13 = scmp.lt.s32.totalorder %s422_s4, %s422_s4 }
  0x1d   :  { %p429_p0 = por %p428_p13, %p427_p12 }
  0x1f   :  { %p430_p1 = pnand %p429_p0, %p423_p11 }
  0x21   :  { %433 = shalt.err (!%p430_p1)
}
  0x22   :  { %31 = dma.hbm_to_vmem [thread:$0]  %s532_s1, 128, %s29_s24, [#allocation6]  }
  0x23   :  { %456 = dma.done.wait [#allocation3], 512  }
  0x24   :  { %457 = vsyncadd [#allocation3], 4294966784 }
  0x25   :  { %458 = dma.done.wait [#allocation6], 128  }
  0x26   :  { %459 = vsyncadd [#allocation6], 4294967168  ;;  %v466_v0 = vmov 0.0|0.0   ;;  %vm467_vm0 = vmmov 0   ;;  %v468_v1 = vmov 0.0   ;;  %v469_v2 = vmov 40  }
  0x27   :  { %364 = vmatprep.subr.bf16.mxu0 %v466_v0  ;;  %351 = vmatprep.mubr.msk.f32.mxu0 %vm467_vm0, %v468_v1  ;;  %v38_v3 = vld [vmem:[#allocation2] sm:$0xff]  ;;  %v39_v4 = vld [vmem:[#allocation2 + $0x8] sm:$0xff]  ;;  %v40_v5 = vld [vmem:[#allocation2 + $0x10] sm:$0xff]  ;;  %s470_s1 = smov 96   ;;  %vm48_vm1 = vcmask 261120   ;;  %v471_v10 = vmov 41  }
  0x28   :  { %383 = vset.pattern.permute.xlu0 %v469_v2  ;;  %354 = vmatprep.subr.mxu1 %v468_v1  ;;  %v365_v6 = vpack.c.bf16 %v39_v4, %v38_v3  ;;  %v41_v7 = vld [vmem:[#allocation2 + $0x18] sm:$0xff]  ;;  %v42_v8 = vld [vmem:[#allocation5] sm:$0xff]  ;;  %s472_s6 = smov 92   ;;  %vm131_vm2 = vcmask 1043456   ;;  %vm128_vm3 = vcmask 31744   ;;  %v473_v17 = vmov 42  }
  0x29   :  { %356 = vmatprep.mubr.msk.f32.mxu1 %vm467_vm0, %v468_v1  ;;  %45 = vperm.xlu0 %383, %v42_v8   ;;  %v368_v9 = vpack.c.bf16 %v41_v7, %v40_v5  ;;  %s474_s7 = smov [#allocation7]  }
  0x2a   :  { %366 = vmatpush3.bf16.msra.mxu0 %v365_v6  ;;  %384 = vset.pattern.permute.xlu1 %v471_v10  ;;  %s319_s8 = sshll.u32 %s474_s7, 4  ;;  %s320_s8 = int_to_ptr.vmem [resolvable:$true] %s319_s8 }
  0x2b   :  { %367 = vmatprep.subr.bf16.mxu0 %v466_v0  ;;  %123 = vperm.xlu1 %384, %v42_v8   ;;  %s434_s9 = scalar_lea.vmem %s320_s8, 16  ;;  %s438_s10 = scalar_lea.vmem %s320_s8, 32 }
  0x2c   :  { %p435_p2 = scmp.ne.s32.totalorder %s320_s8, %s434_s9  ;;  %p439_p3 = scmp.lt.s32.totalorder %s320_s8, %s320_s8 }
  0x2d   :  { %126 = vrot.lane.b32.xlu0 %v42_v8, %s470_s1  ;;  %p440_p4 = scmp.lt.s32.totalorder %s438_s10, %s434_s9 }
  0x2e   :  { %369 = vmatpush3.bf16.msra.mxu0 %v368_v9  ;;  %385 = vset.pattern.permute.xlu0 %v473_v17 }
  0x2f   :  { %210 = vrot.lane.b32.xlu1 %v42_v8, %s472_s6  ;;  %p441_p5 = por %p440_p4, %p439_p3 }
  0x31   :  { %352 = vmatmul.mubr.msk.f32.vlgmr.msra.gmra.mrb[0].mxu0 %vm48_vm1, %v42_v8  ;;  %207 = vperm.xlu0 %385, %v42_v8   ;;  %p442_p6 = pnand %p441_p5, %p435_p2 }
  0xa8   :  { %v46_v11 = vpop.permute.xlu0 %45 }
  0xaa   :  { %v124_v18 = vpop.permute.xlu1 %123 }
  0xac   :  { %v127_v16 = vpop.permute.xlu0 %126 }
  0xae   :  { %v211_v23 = vpop.permute.xlu1 %210 }
  0xb0   :  { %v208_v24 = vpop.permute.xlu0 %207 }
 0x104   :  { %v117_v12 = vpop.f32.mrb[0].mxu0 }
 0x105   :  { %v118_v13 = vadd.f32 %v117_v12, %v46_v11  ;;  %v353_v14 = vpop.f32.mrb[1].mxu0 }
 0x107   :  { %v121_v15 = vmax.f32 %v118_v13, 0.0 }
 0x109   :  { %355 = vmatpush3.msk.msra.mxu1 %vm131_vm2, %v121_v15 }
 0x10a   :  { %357 = vmatmul.mubr.msk.f32.vlgmr.msra.gmra.mrb[0].mxu1 %vm128_vm3, %v127_v16  ;;  %359 = vmatprep.subr.mxu1 %v468_v1 }
 0x10b   :  { %361 = vmatprep.mubr.msk.f32.mxu1 %vm467_vm0, %v468_v1 }
 0x1dd   :  { %v201_v19 = vpop.f32.mrb[0].mxu1 }
 0x1de   :  { %v202_v20 = vadd.f32 %v201_v19, %v124_v18  ;;  %v358_v21 = vpop.f32.mrb[1].mxu1 }
 0x1e0   :  { %v205_v22 = vmax.f32 %v202_v20, 0.0 }
 0x1e2   :  { %360 = vmatpush3.msk.msra.mxu1 %vm131_vm2, %v205_v22 }
 0x1e3   :  { %362 = vmatmul.mubr.msk.f32.vlgmr.msra.gmra.mrb[2].mxu1 %vm128_vm3, %v211_v23 }
 0x2b6   :  { %v283_v25 = vpop.f32.mrb[2].mxu1 }
 0x2b7   :  { %v284_v26 = vadd.f32 %v283_v25, %v208_v24  ;;  %v363_v27 = vpop.f32.mrb[3].mxu1 }
 0x2b9   :  { %v287_v28 = vand.u32 2147483647, %v284_v26  ;;  %vm309_vm4 = vcmp.lt.f32.partialorder %v284_v26, 0.0 }
 0x2bb   :  { %v288_v29 = vmul.f32 0.3275911, %v287_v28  ;;  %v303_v33 = vsub.f32 0.0, %v287_v28 }
 0x2bd   :  { %v289_v30 = vadd.f32 1.0, %v288_v29  ;;  %v304_v36 = vmul.f32 %v303_v33, %v287_v28 }
 0x2bf   :  { %386 = vrcp.f32 %v289_v30  ;;  %v305_v39 = vmul.f32 1.442695, %v304_v36 }
 0x2c1   :  { %388 = vpow2.f32 %v305_v39 }
 0x2c9   :  { %v387_v31 = vpop.eup %386 }
 0x2ca   :  { %v291_v32 = vmul.f32 %v387_v31, %v289_v30 }
 0x2cb   :  { %v389_v47 = vpop.eup %388 }
 0x2cc   :  { %v292_v34 = vsub.f32 2.0, %v291_v32 }
 0x2ce   :  { %v293_v35 = vmul.f32 %v387_v31, %v292_v34 }
 0x2d0   :  { %v294_v37 = vmul.f32 1.0614054, %v293_v35 }
 0x2d2   :  { %v295_v38 = vadd.f32 -1.4531521, %v294_v37 }
 0x2d4   :  { %v296_v40 = vmul.f32 %v295_v38, %v293_v35 }
 0x2d6   :  { %v297_v41 = vadd.f32 1.4214138, %v296_v40 }
 0x2d8   :  { %v298_v42 = vmul.f32 %v297_v41, %v293_v35 }
 0x2da   :  { %v299_v43 = vadd.f32 -0.28449672, %v298_v42 }
 0x2dc   :  { %v300_v44 = vmul.f32 %v299_v43, %v293_v35 }
 0x2de   :  { %v301_v45 = vadd.f32 0.2548296, %v300_v44 }
 0x2e0   :  { %v302_v46 = vmul.f32 %v301_v45, %v293_v35 }
 0x2e2   :  { %v307_v48 = vmul.f32 %v389_v47, %v302_v46 }
 0x2e4   :  { %v308_v49 = vsub.f32 1.0, %v307_v48 }
 0x2e6   :  { %v310_v50 = vsub.f32 0.0, %v308_v49 }
 0x2e8   :  { %v311_v51 = vsel %vm309_vm4, %v310_v50, %v308_v49 }
 0x2e9   :  { %312 = vst [vmem:[#allocation7] sm:$0x1] %v311_v51 }
 0x2ea   :  { %445 = shalt.err (!%p442_p6)
}
 0x2eb   :  { %s446_s13 = scalar_lea.hbm %s533_s2, 16 }
 0x2ec   :  { %p447_p7 = scmp.ne.s32.totalorder %s533_s2, %s446_s13  ;;  %p450_p8 = scmp.lt.u32.totalorder %s446_s13, %s533_s2 }
 0x2ee   :  { %p452_p9 = pnand %p450_p8, %p447_p7 }
 0x2f0   :  { %455 = shalt.err (!%p452_p9)
}
 0x2f1   :  { %322 = dma.vmem_to_hbm [thread:$0]  %s320_s8, 16, %s533_s2, [#allocation4]  }
 0x2f2   :  { %460 = dma.done.wait [#allocation4], 16  }
 0x2f3   :  { %461 = vsyncadd [#allocation4], 4294967280 }
 0x2f4   :  { %326 = vsyncpa [#allocation3], 1 }
 0x2f5   :  { %327 = vsyncpa [#allocation6], 1 }
 0x2f6   :  { %328 = vsyncpa [#allocation4], 1 }

</bundles_post_ra>
